<compile_context>
chip_gen: v5e
topology: v5e:2x2
jax: 0.10.0
libtpu: 0.0.40
codegen_flags: <defaults>
</compile_context>

<pallas_src>
import jax
import jax.numpy as jnp
from jax.experimental import pallas as pl
from jax.experimental.pallas import tpu as pltpu


def actor_kernel(x_ref,
                 w1_ref, b1_ref,
                 w2_ref, b2_ref,
                 w3_ref, b3_ref,
                 w4_ref, b4_ref,
                 wm_ref, bm_ref,
                 o_ref):
    """One batch tile: 5 MXU matmuls (bf16 operands, f32 acc) + f32 VPU/EUP ops."""
    x = x_ref[...].astype(jnp.bfloat16)

    h = jnp.dot(x, w1_ref[...], preferred_element_type=jnp.float32) + b1_ref[...]
    h = jnp.maximum(h, 0.0)

    h = jnp.dot(h.astype(jnp.bfloat16), w2_ref[...],
                preferred_element_type=jnp.float32) + b2_ref[...]
    h = jnp.maximum(h, 0.0)

    # dropout(p=0.1): identity in eval mode.

    h = jnp.dot(h.astype(jnp.bfloat16), w3_ref[...],
                preferred_element_type=jnp.float32) + b3_ref[...]
    h = jnp.maximum(h, 0.0)

    h = jnp.dot(h.astype(jnp.bfloat16), w4_ref[...],
                preferred_element_type=jnp.float32) + b4_ref[...]
    h = jnp.maximum(h, 0.0)

    mu = jnp.dot(h.astype(jnp.bfloat16), wm_ref[...],
                 preferred_element_type=jnp.float32) + bm_ref[...]
    o_ref[...] = (jnp.tanh(mu) * 2.0).astype(o_ref.dtype)


def _round_up(x, m):
    return ((x + m - 1) // m) * m


def _pad2(a, rows, cols):
    pr, pc = rows - a.shape[0], cols - a.shape[1]
    if pr or pc:
        a = jnp.pad(a, ((0, pr), (0, pc)))
    return a


def actor_forward(state, params, *, block_b=256):
    """params: dict with w1..w4, wm (shape (in, out)) and b1..b4, bm (shape (1, out))."""
    B, in_dim = state.shape
    density = params["w1"].shape[1]
    n_actions = params["wm"].shape[1]

    # Lane-align feature dims; sublane/tile-align the batch.
    in_pad = _round_up(in_dim, 128)
    out_pad = _round_up(n_actions, 128)
    block_b = max(8, min(block_b, _round_up(B, 8)))
    b_pad = _round_up(B, block_b)

    # Inputs: zero-pad (zero rows of w1 / zero cols of x contribute nothing).
    x = _pad2(state.astype(jnp.float32), b_pad, in_pad)

    # Weights in bf16 (MXU operands); biases stay f32 (added post-accumulation).
    w1 = _pad2(params["w1"], in_pad, density).astype(jnp.bfloat16)
    w2 = params["w2"].astype(jnp.bfloat16)
    w3 = params["w3"].astype(jnp.bfloat16)
    w4 = params["w4"].astype(jnp.bfloat16)
    wm = _pad2(params["wm"], density, out_pad).astype(jnp.bfloat16)
    b1 = params["b1"].astype(jnp.float32)
    b2 = params["b2"].astype(jnp.float32)
    b3 = params["b3"].astype(jnp.float32)
    b4 = params["b4"].astype(jnp.float32)
    bm = _pad2(params["bm"], 1, out_pad).astype(jnp.float32)

    weights = (w1, b1, w2, b2, w3, b3, w4, b4, wm, bm)

    def resident(a):
        # Constant block index -> stays in VMEM across the whole batch grid.
        return pl.BlockSpec(a.shape, lambda i: (0, 0))

    in_specs = [pl.BlockSpec((block_b, in_pad), lambda i: (i, 0))]
    in_specs += [resident(a) for a in weights]
    out_specs = pl.BlockSpec((block_b, out_pad), lambda i: (i, 0))

    # VMEM budget from actual footprint (weights once + double-buffered tiles
    # + f32 activations), with slack; safely below v7x's 64 MiB physical VMEM.
    weight_bytes = sum(int(a.size) * a.dtype.itemsize for a in weights)
    act_bytes = block_b * (2 * (in_pad + out_pad) + 4 * density) * 4
    vmem_limit = min(2 * weight_bytes + 2 * act_bytes + (4 << 20), 48 << 20)

    out = pl.pallas_call(
        actor_kernel,
        out_shape=jax.ShapeDtypeStruct((b_pad, out_pad), jnp.float32),
        grid=(b_pad // block_b,),
        in_specs=in_specs,
        out_specs=out_specs,
        compiler_params=pltpu.CompilerParams(
            dimension_semantics=("parallel",),
            vmem_limit_bytes=int(vmem_limit),
        ),
    )(x, *weights)

    return out[:B, :n_actions]


def init_actor_params(key, input_dim, n_actions, density):
    """Deterministic init mirroring torch.nn.Linear default (uniform +/- 1/sqrt(fan_in)).
    Weights stored pre-transposed as (in, out)."""
    def linear(k, fan_in, fan_out):
        kw, kb = jax.random.split(k)
        bound = 1.0 / jnp.sqrt(jnp.float32(fan_in))
        w = jax.random.uniform(kw, (fan_in, fan_out), jnp.float32, -bound, bound)
        b = jax.random.uniform(kb, (1, fan_out), jnp.float32, -bound, bound)
        return w, b

    k1, k2, k3, k4, km = jax.random.split(key, 5)
    w1, b1 = linear(k1, input_dim, density)
    w2, b2 = linear(k2, density, density)
    w3, b3 = linear(k3, density, density)
    w4, b4 = linear(k4, density, density)
    wm, bm = linear(km, density, n_actions)
    return dict(w1=w1, b1=b1, w2=w2, b2=b2, w3=w3, b3=b3,
                w4=w4, b4=b4, wm=wm, bm=bm)


def actor_reference_f32(state, p):
    """Pure-f32 JAX reference (module semantics)."""
    h = jax.nn.relu(state @ p["w1"] + p["b1"])
    h = jax.nn.relu(h @ p["w2"] + p["b2"])
    h = jax.nn.relu(h @ p["w3"] + p["b3"])
    h = jax.nn.relu(h @ p["w4"] + p["b4"])
    return jnp.tanh(h @ p["wm"] + p["bm"]) * 2.0


def actor_reference_bf16(state, p):
    """Reference mirroring the kernel's numerics (bf16 MXU operands, f32 acc)."""
    bf = jnp.bfloat16
    def dense(x, w, b):
        return jnp.dot(x.astype(bf), w.astype(bf),
                       preferred_element_type=jnp.float32) + b
    h = jax.nn.relu(dense(state, p["w1"], p["b1"]))
    h = jax.nn.relu(dense(h, p["w2"], p["b2"]))
    h = jax.nn.relu(dense(h, p["w3"], p["b3"]))
    h = jax.nn.relu(dense(h, p["w4"], p["b4"]))
    return jnp.tanh(dense(h, p["wm"], p["bm"])) * 2.0


if __name__ == "__main__":
    # Small shapes consistent with the module: state vector input -> action vector.
    batch = 8
    input_dim = 32
    n_actions = 4
    density = 128  # module default is 512; kept small and lane-aligned for the test

    key = jax.random.PRNGKey(0)
    k_params, k_state, k_state2 = jax.random.split(key, 3)

    params = init_actor_params(k_params, input_dim, n_actions, density)
    state = jax.random.normal(k_state, (batch, input_dim), dtype=jnp.float32)

    out = actor_forward(state, params)
    out = jax.block_until_ready(out)

    ref_bf = actor_reference_bf16(state, params)
    ref_f32 = actor_reference_f32(state, params)

    assert out.shape == (batch, n_actions)
    assert jnp.allclose(out, ref_bf, atol=1e-2, rtol=1e-2), "mismatch vs bf16 reference"
    assert jnp.allclose(out, ref_f32, atol=6e-2, rtol=6e-2), "mismatch vs f32 reference"
    assert bool(jnp.all(jnp.abs(out) <= 2.0)), "tanh*2 range violated"

    # Exercise the multi-tile batch-grid path (ragged batch padded to tiles).
    big_batch = 300
    state_big = jax.random.normal(k_state2, (big_batch, input_dim), dtype=jnp.float32)
    out_big = jax.block_until_ready(actor_forward(state_big, params))
    ref_big = actor_reference_bf16(state_big, params)
    assert out_big.shape == (big_batch, n_actions)
    assert jnp.allclose(out_big, ref_big, atol=1e-2, rtol=1e-2), "mismatch (tiled path)"

    print("KERNEL_OK")
</pallas_src>

<mosaic_0001>
module attributes {stable_mosaic.version = 11 : i64} {
  func.func @actor_kernel(%arg0: i32, %arg1: memref<8x128xf32, #tpu.memory_space<vmem>>, %arg2: memref<128x128xbf16, #tpu.memory_space<vmem>>, %arg3: memref<1x128xf32, #tpu.memory_space<vmem>>, %arg4: memref<128x128xbf16, #tpu.memory_space<vmem>>, %arg5: memref<1x128xf32, #tpu.memory_space<vmem>>, %arg6: memref<128x128xbf16, #tpu.memory_space<vmem>>, %arg7: memref<1x128xf32, #tpu.memory_space<vmem>>, %arg8: memref<128x128xbf16, #tpu.memory_space<vmem>>, %arg9: memref<1x128xf32, #tpu.memory_space<vmem>>, %arg10: memref<128x128xbf16, #tpu.memory_space<vmem>>, %arg11: memref<1x128xf32, #tpu.memory_space<vmem>>, %arg12: memref<8x128xf32, #tpu.memory_space<vmem>>) attributes {dimension_semantics = [#tpu.dimension_semantics<parallel>], iteration_bounds = array<i64: 1>, scalar_prefetch = 0 : i64, scratch_operands = 0 : i64, tpu.core_type = #tpu.core_type<tc>, window_params = [{transform_indices = @transform_0, window_bounds = array<i64: 8, 128>}, {pipeline_mode = #tpu.pipeline_mode<synchronous>, transform_indices = @transform_1, window_bounds = array<i64: 128, 128>}, {pipeline_mode = #tpu.pipeline_mode<synchronous>, transform_indices = @transform_2, window_bounds = array<i64: 1, 128>}, {pipeline_mode = #tpu.pipeline_mode<synchronous>, transform_indices = @transform_3, window_bounds = array<i64: 128, 128>}, {pipeline_mode = #tpu.pipeline_mode<synchronous>, transform_indices = @transform_4, window_bounds = array<i64: 1, 128>}, {pipeline_mode = #tpu.pipeline_mode<synchronous>, transform_indices = @transform_5, window_bounds = array<i64: 128, 128>}, {pipeline_mode = #tpu.pipeline_mode<synchronous>, transform_indices = @transform_6, window_bounds = array<i64: 1, 128>}, {pipeline_mode = #tpu.pipeline_mode<synchronous>, transform_indices = @transform_7, window_bounds = array<i64: 128, 128>}, {pipeline_mode = #tpu.pipeline_mode<synchronous>, transform_indices = @transform_8, window_bounds = array<i64: 1, 128>}, {pipeline_mode = #tpu.pipeline_mode<synchronous>, transform_indices = @transform_9, window_bounds = array<i64: 128, 128>}, {pipeline_mode = #tpu.pipeline_mode<synchronous>, transform_indices = @transform_10, window_bounds = array<i64: 1, 128>}, {transform_indices = @transform_11, window_bounds = array<i64: 8, 128>}]} {
    %c0 = arith.constant 0 : index
    %c0_0 = arith.constant 0 : index
    %0 = vector.load %arg1[%c0, %c0_0] : memref<8x128xf32, #tpu.memory_space<vmem>>, vector<8x128xf32>
    %1 = arith.truncf %0 : vector<8x128xf32> to vector<8x128xbf16>
    %c0_1 = arith.constant 0 : index
    %c0_2 = arith.constant 0 : index
    %2 = vector.load %arg2[%c0_1, %c0_2] : memref<128x128xbf16, #tpu.memory_space<vmem>>, vector<128x128xbf16>
    %cst = arith.constant dense<0.000000e+00> : vector<8x128xf32>
    %3 = tpu.matmul %1, %2, %cst {dimension_numbers = #tpu.dot_dimension_numbers<[1], [0], [0], [1], [0, 0, 1, 1], [], []>} : vector<8x128xbf16>, vector<128x128xbf16>, vector<8x128xf32> -> vector<8x128xf32>
    %c0_3 = arith.constant 0 : index
    %c0_4 = arith.constant 0 : index
    %4 = vector.load %arg3[%c0_3, %c0_4] : memref<1x128xf32, #tpu.memory_space<vmem>>, vector<1x128xf32>
    %5 = vector.broadcast %4 : vector<1x128xf32> to vector<8x128xf32>
    %6 = arith.addf %3, %5 : vector<8x128xf32>
    %cst_5 = arith.constant 0.000000e+00 : f32
    %7 = vector.broadcast %cst_5 : f32 to vector<8x128xf32>
    %8 = arith.maximumf %6, %7 : vector<8x128xf32>
    %9 = arith.truncf %8 : vector<8x128xf32> to vector<8x128xbf16>
    %c0_6 = arith.constant 0 : index
    %c0_7 = arith.constant 0 : index
    %10 = vector.load %arg4[%c0_6, %c0_7] : memref<128x128xbf16, #tpu.memory_space<vmem>>, vector<128x128xbf16>
    %cst_8 = arith.constant dense<0.000000e+00> : vector<8x128xf32>
    %11 = tpu.matmul %9, %10, %cst_8 {dimension_numbers = #tpu.dot_dimension_numbers<[1], [0], [0], [1], [0, 0, 1, 1], [], []>} : vector<8x128xbf16>, vector<128x128xbf16>, vector<8x128xf32> -> vector<8x128xf32>
    %c0_9 = arith.constant 0 : index
    %c0_10 = arith.constant 0 : index
    %12 = vector.load %arg5[%c0_9, %c0_10] : memref<1x128xf32, #tpu.memory_space<vmem>>, vector<1x128xf32>
    %13 = vector.broadcast %12 : vector<1x128xf32> to vector<8x128xf32>
    %14 = arith.addf %11, %13 : vector<8x128xf32>
    %cst_11 = arith.constant 0.000000e+00 : f32
    %15 = vector.broadcast %cst_11 : f32 to vector<8x128xf32>
    %16 = arith.maximumf %14, %15 : vector<8x128xf32>
    %17 = arith.truncf %16 : vector<8x128xf32> to vector<8x128xbf16>
    %c0_12 = arith.constant 0 : index
    %c0_13 = arith.constant 0 : index
    %18 = vector.load %arg6[%c0_12, %c0_13] : memref<128x128xbf16, #tpu.memory_space<vmem>>, vector<128x128xbf16>
    %cst_14 = arith.constant dense<0.000000e+00> : vector<8x128xf32>
    %19 = tpu.matmul %17, %18, %cst_14 {dimension_numbers = #tpu.dot_dimension_numbers<[1], [0], [0], [1], [0, 0, 1, 1], [], []>} : vector<8x128xbf16>, vector<128x128xbf16>, vector<8x128xf32> -> vector<8x128xf32>
    %c0_15 = arith.constant 0 : index
    %c0_16 = arith.constant 0 : index
    %20 = vector.load %arg7[%c0_15, %c0_16] : memref<1x128xf32, #tpu.memory_space<vmem>>, vector<1x128xf32>
    %21 = vector.broadcast %20 : vector<1x128xf32> to vector<8x128xf32>
    %22 = arith.addf %19, %21 : vector<8x128xf32>
    %cst_17 = arith.constant 0.000000e+00 : f32
    %23 = vector.broadcast %cst_17 : f32 to vector<8x128xf32>
    %24 = arith.maximumf %22, %23 : vector<8x128xf32>
    %25 = arith.truncf %24 : vector<8x128xf32> to vector<8x128xbf16>
    %c0_18 = arith.constant 0 : index
    %c0_19 = arith.constant 0 : index
    %26 = vector.load %arg8[%c0_18, %c0_19] : memref<128x128xbf16, #tpu.memory_space<vmem>>, vector<128x128xbf16>
    %cst_20 = arith.constant dense<0.000000e+00> : vector<8x128xf32>
    %27 = tpu.matmul %25, %26, %cst_20 {dimension_numbers = #tpu.dot_dimension_numbers<[1], [0], [0], [1], [0, 0, 1, 1], [], []>} : vector<8x128xbf16>, vector<128x128xbf16>, vector<8x128xf32> -> vector<8x128xf32>
    %c0_21 = arith.constant 0 : index
    %c0_22 = arith.constant 0 : index
    %28 = vector.load %arg9[%c0_21, %c0_22] : memref<1x128xf32, #tpu.memory_space<vmem>>, vector<1x128xf32>
    %29 = vector.broadcast %28 : vector<1x128xf32> to vector<8x128xf32>
    %30 = arith.addf %27, %29 : vector<8x128xf32>
    %cst_23 = arith.constant 0.000000e+00 : f32
    %31 = vector.broadcast %cst_23 : f32 to vector<8x128xf32>
    %32 = arith.maximumf %30, %31 : vector<8x128xf32>
    %33 = arith.truncf %32 : vector<8x128xf32> to vector<8x128xbf16>
    %c0_24 = arith.constant 0 : index
    %c0_25 = arith.constant 0 : index
    %34 = vector.load %arg10[%c0_24, %c0_25] : memref<128x128xbf16, #tpu.memory_space<vmem>>, vector<128x128xbf16>
    %cst_26 = arith.constant dense<0.000000e+00> : vector<8x128xf32>
    %35 = tpu.matmul %33, %34, %cst_26 {dimension_numbers = #tpu.dot_dimension_numbers<[1], [0], [0], [1], [0, 0, 1, 1], [], []>} : vector<8x128xbf16>, vector<128x128xbf16>, vector<8x128xf32> -> vector<8x128xf32>
    %c0_27 = arith.constant 0 : index
    %c0_28 = arith.constant 0 : index
    %36 = vector.load %arg11[%c0_27, %c0_28] : memref<1x128xf32, #tpu.memory_space<vmem>>, vector<1x128xf32>
    %37 = vector.broadcast %36 : vector<1x128xf32> to vector<8x128xf32>
    %38 = arith.addf %35, %37 : vector<8x128xf32>
    %39 = math.tanh %38 : vector<8x128xf32>
    %cst_29 = arith.constant 2.000000e+00 : f32
    %40 = vector.broadcast %cst_29 : f32 to vector<8x128xf32>
    %41 = arith.mulf %39, %40 : vector<8x128xf32>
    %c0_30 = arith.constant 0 : index
    %c0_31 = arith.constant 0 : index
    %42 = vector.load %arg12[%c0_30, %c0_31] : memref<8x128xf32, #tpu.memory_space<vmem>>, vector<8x128xf32>
    tpu.vector_store %arg12[%c0_30, %c0_31], %41 {strides = array<i32>} : memref<8x128xf32, #tpu.memory_space<vmem>>, vector<8x128xf32>,
    return
  }
  func.func @transform_0(%arg0: i32) -> (i32, i32) {
    %c0_i32 = arith.constant 0 : i32
    %c0_i32_0 = arith.constant 0 : i32
    return %arg0, %c0_i32 : i32, i32
  }
  func.func @transform_1(%arg0: i32) -> (i32, i32) {
    %c0_i32 = arith.constant 0 : i32
    %c0_i32_0 = arith.constant 0 : i32
    %c0_i32_1 = arith.constant 0 : i32
    return %c0_i32, %c0_i32_0 : i32, i32
  }
  func.func @transform_2(%arg0: i32) -> (i32, i32) {
    %c0_i32 = arith.constant 0 : i32
    %c0_i32_0 = arith.constant 0 : i32
    %c0_i32_1 = arith.constant 0 : i32
    return %c0_i32, %c0_i32_0 : i32, i32
  }
  func.func @transform_3(%arg0: i32) -> (i32, i32) {
    %c0_i32 = arith.constant 0 : i32
    %c0_i32_0 = arith.constant 0 : i32
    %c0_i32_1 = arith.constant 0 : i32
    return %c0_i32, %c0_i32_0 : i32, i32
  }
  func.func @transform_4(%arg0: i32) -> (i32, i32) {
    %c0_i32 = arith.constant 0 : i32
    %c0_i32_0 = arith.constant 0 : i32
    %c0_i32_1 = arith.constant 0 : i32
    return %c0_i32, %c0_i32_0 : i32, i32
  }
  func.func @transform_5(%arg0: i32) -> (i32, i32) {
    %c0_i32 = arith.constant 0 : i32
    %c0_i32_0 = arith.constant 0 : i32
    %c0_i32_1 = arith.constant 0 : i32
    return %c0_i32, %c0_i32_0 : i32, i32
  }
  func.func @transform_6(%arg0: i32) -> (i32, i32) {
    %c0_i32 = arith.constant 0 : i32
    %c0_i32_0 = arith.constant 0 : i32
    %c0_i32_1 = arith.constant 0 : i32
    return %c0_i32, %c0_i32_0 : i32, i32
  }
  func.func @transform_7(%arg0: i32) -> (i32, i32) {
    %c0_i32 = arith.constant 0 : i32
    %c0_i32_0 = arith.constant 0 : i32
    %c0_i32_1 = arith.constant 0 : i32
    return %c0_i32, %c0_i32_0 : i32, i32
  }
  func.func @transform_8(%arg0: i32) -> (i32, i32) {
    %c0_i32 = arith.constant 0 : i32
    %c0_i32_0 = arith.constant 0 : i32
    %c0_i32_1 = arith.constant 0 : i32
    return %c0_i32, %c0_i32_0 : i32, i32
  }
  func.func @transform_9(%arg0: i32) -> (i32, i32) {
    %c0_i32 = arith.constant 0 : i32
    %c0_i32_0 = arith.constant 0 : i32
    %c0_i32_1 = arith.constant 0 : i32
    return %c0_i32, %c0_i32_0 : i32, i32
  }
  func.func @transform_10(%arg0: i32) -> (i32, i32) {
    %c0_i32 = arith.constant 0 : i32
    %c0_i32_0 = arith.constant 0 : i32
    %c0_i32_1 = arith.constant 0 : i32
    return %c0_i32, %c0_i32_0 : i32, i32
  }
  func.func @transform_11(%arg0: i32) -> (i32, i32) {
    %c0_i32 = arith.constant 0 : i32
    %c0_i32_0 = arith.constant 0 : i32
    return %arg0, %c0_i32 : i32, i32
  }
}

</mosaic_0001>

<bundles_post_ra>
// kernel: tpu_custom_call.1
= control target key start
LH: loop header
LB: loop body
LE: loop exit
PB: predicated region body
PF: predicated region fallthrough
CT: control target
= control target key end

     0   :  { %16 = vsyncpa [#allocation3], 0  ;;  %s1083_s0 = inlined_call_operand.hbm [shape: f32[8,128], index: 0, kind: input, shape index: {}]   ;;  %s1084_s1 = inlined_call_operand.hbm [shape: bf16[128,128], index: 1, kind: input, shape index: {}]   ;;  %s1085_s2 = inlined_call_operand.vmem [shape: f32[1,128], index: 2, kind: input, shape index: {}]   ;;  %s1086_s3 = inlined_call_operand.hbm [shape: bf16[128,128], index: 3, kind: input, shape index: {}]   ;;  %s1087_s4 = inlined_call_operand.vmem [shape: f32[1,128], index: 4, kind: input, shape index: {}]   ;;  %s1088_s5 = inlined_call_operand.hbm [shape: bf16[128,128], index: 5, kind: input, shape index: {}]   ;;  %s1089_s6 = inlined_call_operand.vmem [shape: f32[1,128], index: 6, kind: input, shape index: {}]   ;;  %s1090_s7 = inlined_call_operand.hbm [shape: bf16[128,128], index: 7, kind: input, shape index: {}]   ;;  %s1091_s8 = inlined_call_operand.vmem [shape: f32[1,128], index: 8, kind: input, shape index: {}]   ;;  %s1092_s9 = inlined_call_operand.hbm [shape: bf16[128,128], index: 9, kind: input, shape index: {}]   ;;  %s1093_s10 = inlined_call_operand.vmem [shape: f32[1,128], index: 10, kind: input, shape index: {}]   ;;  %s1094_s11 = inlined_call_operand.hbm [shape: f32[8,128], index: 11, kind: output, shape index: {}]  }
   0x1   :  { %17 = vsyncpa [#allocation6], 0 }
   0x2   :  { %18 = vsyncpa [#allocation9], 0 }
   0x3   :  { %19 = vsyncpa [#allocation12], 0  ;;  %s36_s19 = sshll.u32 %s1084_s1, 4  ;;  %s37_s19 = int_to_ptr.hbm [resolvable:$true] %s36_s19 }
   0x4   :  { %20 = vsyncpa [#allocation4], 0  ;;  %s963_s20 = smov [#allocation5]   ;;  %s66_s24 = sshll.u32 %s1088_s5, 4  ;;  %s67_s24 = int_to_ptr.hbm [resolvable:$true] %s66_s24 }
   0x5   :  { %s38_s21 = sshll.u32 %s963_s20, 4  ;;  %s964_s25 = smov 64   ;;  %s39_s21 = int_to_ptr.vmem [resolvable:$true] %s38_s21 }
   0x6   :  { %s965_s26 = smov 4   ;;  %s966_s27 = smov [#allocation8]  }
   0x7   :  { %44 = dma.hbm_to_vmem [thread:$0]  %s37_s19, 1024, %s39_s21, [#allocation6], %s964_s25, %s964_s25, %s965_s26  }
   0x8   :  { %s68_s28 = sshll.u32 %s966_s27, 4  ;;  %s26_s30 = sshll.u32 %s1083_s0, 4  ;;  %s69_s28 = int_to_ptr.vmem [resolvable:$true] %s68_s28  ;;  %s27_s30 = int_to_ptr.hbm [resolvable:$true] %s26_s30 }
   0x9   :  { %74 = dma.hbm_to_vmem [thread:$0]  %s67_s24, 1024, %s69_s28, [#allocation9], %s964_s25, %s964_s25, %s965_s26  }
   0xa   :  { %s51_s13 = sshll.u32 %s1086_s3, 4  ;;  %s967_s14 = smov [#allocation2]   ;;  %s52_s13 = int_to_ptr.hbm [resolvable:$true] %s51_s13 }
   0xb   :  { %s28_s15 = sshll.u32 %s967_s14, 4  ;;  %s968_s16 = smov [#allocation7]   ;;  %s29_s15 = int_to_ptr.vmem [resolvable:$true] %s28_s15 }
   0xc   :  { %31 = dma.hbm_to_vmem [thread:$0]  %s27_s30, 128, %s29_s15, [#allocation3]  }
   0xd   :  { %s53_s17 = sshll.u32 %s968_s16, 4  ;;  %s81_s0 = sshll.u32 %s1090_s7, 4  ;;  %s54_s17 = int_to_ptr.vmem [resolvable:$true] %s53_s17  ;;  %s82_s0 = int_to_ptr.hbm [resolvable:$true] %s81_s0 }
   0xe   :  { %59 = dma.hbm_to_vmem [thread:$0]  %s52_s13, 1024, %s54_s17, [#allocation6], %s964_s25, %s964_s25, %s965_s26  }
   0xf   :  { %s96_s3 = sshll.u32 %s1092_s9, 4  ;;  %s969_s22 = smov [#allocation10]   ;;  %s97_s3 = int_to_ptr.hbm [resolvable:$true] %s96_s3 }
  0x10   :  { %s83_s23 = sshll.u32 %s969_s22, 4  ;;  %s970_s24 = smov [#allocation11]   ;;  %s84_s23 = int_to_ptr.vmem [resolvable:$true] %s83_s23 }
  0x11   :  { %89 = dma.hbm_to_vmem [thread:$0]  %s82_s0, 1024, %s84_s23, [#allocation9], %s964_s25, %s964_s25, %s965_s26  }
  0x12   :  { %s98_s7 = sshll.u32 %s970_s24, 4  ;;  %s99_s7 = int_to_ptr.vmem [resolvable:$true] %s98_s7 }
  0x13   :  { %104 = dma.hbm_to_vmem [thread:$0]  %s97_s3, 1024, %s99_s7, [#allocation12], %s964_s25, %s964_s25, %s965_s26  }
  0x14   :  { %953 = dma.done.wait [#allocation3], 128  }
  0x15   :  { %954 = vsyncadd [#allocation3], 4294967168 }
  0x16   :  { %955 = dma.done.wait [#allocation6], 2048  }
  0x17   :  { %956 = vsyncadd [#allocation6], 4294965248 }
  0x18   :  { %957 = dma.done.wait [#allocation9], 2048  }
  0x19   :  { %958 = vsyncadd [#allocation9], 4294965248 }
  0x1a   :  { %959 = dma.done.wait [#allocation12], 1024  }
  0x1b   :  { %960 = vsyncadd [#allocation12], 4294966272  ;;  %v736_v0 = vld [vmem:[#allocation5 + $0x38] sm:$0xff]  ;;  %v735_v1 = vld [vmem:[#allocation5 + $0x30] sm:$0xff]  ;;  %s971_s30 = smov [#allocation13]   ;;  %s556_s14 = sshll.u32 %s1094_s11, 4  ;;  %s557_s14 = int_to_ptr.hbm [resolvable:$true] %s556_s14 }
  0x1c   :  { %201 = vmatpush.bf16.msra.mxu0 %v736_v0  ;;  %v744_v2 = vld [vmem:[#allocation7 + $0x38] sm:$0xff]  ;;  %v734_v3 = vld [vmem:[#allocation5 + $0x28] sm:$0xff]  ;;  %v743_v4 = vld [vmem:[#allocation7 + $0x30] sm:$0xff]  ;;  %s554_s5 = sshll.u32 %s971_s30, 4  ;;  %s555_s5 = int_to_ptr.vmem [resolvable:$true] %s554_s5 }
  0x1d   :  { %284 = vmatpush.bf16.msra.mxu1 %v744_v2  ;;  %v742_v5 = vld [vmem:[#allocation7 + $0x28] sm:$0xff]  ;;  %v733_v6 = vld [vmem:[#allocation5 + $0x20] sm:$0xff]  ;;  %v732_v8 = vld [vmem:[#allocation5 + $0x18] sm:$0xff] }
  0x1e   :  { %v741_v7 = vld [vmem:[#allocation7 + $0x20] sm:$0xff]  ;;  %v740_v9 = vld [vmem:[#allocation7 + $0x18] sm:$0xff]  ;;  %v731_v10 = vld [vmem:[#allocation5 + $0x10] sm:$0xff] }
  0x1f   :  { %v739_v11 = vld [vmem:[#allocation7 + $0x10] sm:$0xff]  ;;  %v730_v12 = vld [vmem:[#allocation5 + $0x8] sm:$0xff]  ;;  %v729_v13 = vld [vmem:[#allocation5] sm:$0xff] }
  0x20   :  { %202 = vmatpush.bf16.msra.mxu0 %v735_v1  ;;  %v131_v14 = vld [vmem:[#allocation2] sm:$0xff]  ;;  %v738_v16 = vld [vmem:[#allocation7 + $0x8] sm:$0xff]  ;;  %v737_v17 = vld [vmem:[#allocation7] sm:$0xff] }
  0x21   :  { %285 = vmatpush.bf16.msra.mxu1 %v743_v4  ;;  %v132_v15 = vpack.c.bf16 %v131_v14, %v131_v14  ;;  %v752_v18 = vld [vmem:[#allocation8 + $0x38] sm:$0xff]  ;;  %v751_v19 = vld [vmem:[#allocation8 + $0x30] sm:$0xff]  ;;  %v750_v20 = vld [vmem:[#allocation8 + $0x28] sm:$0xff] }
  0x22   :  { %367 = vmatpush.bf16.msra.mxu2 %v752_v18  ;;  %v749_v21 = vld [vmem:[#allocation8 + $0x20] sm:$0xff]  ;;  %v748_v22 = vld [vmem:[#allocation8 + $0x18] sm:$0xff]  ;;  %v747_v23 = vld [vmem:[#allocation8 + $0x10] sm:$0xff] }
  0x23   :  { %v778_v24 = vld [vmem:[%s1085_s2] ss:$0 sm:$0xff]  ;;  %v746_v30 = vld [vmem:[#allocation8 + $0x8] sm:$0xff]  ;;  %v745_v31 = vld [vmem:[#allocation8] sm:$0xff] }
  0x24   :  { %203 = vmatpush.bf16.msra.mxu0 %v734_v3  ;;  %v760_v32 = vld [vmem:[#allocation10 + $0x38] sm:$0xff]  ;;  %v759_v33 = vld [vmem:[#allocation10 + $0x30] sm:$0xff]  ;;  %v758_v34 = vld [vmem:[#allocation10 + $0x28] sm:$0xff] }
  0x25   :  { %286 = vmatpush.bf16.msra.mxu1 %v742_v5  ;;  %450 = vmatpush.bf16.msra.mxu3 %v760_v32  ;;  %v757_v35 = vld [vmem:[#allocation10 + $0x20] sm:$0xff]  ;;  %v756_v36 = vld [vmem:[#allocation10 + $0x18] sm:$0xff]  ;;  %v755_v37 = vld [vmem:[#allocation10 + $0x10] sm:$0xff] }
  0x26   :  { %368 = vmatpush.bf16.msra.mxu2 %v751_v19  ;;  %v779_v38 = vld [vmem:[%s1087_s4] ss:$0 sm:$0xff]  ;;  %v754_v44 = vld [vmem:[#allocation10 + $0x8] sm:$0xff]  ;;  %v753_v45 = vld [vmem:[#allocation10] sm:$0xff] }
  0x27   :  { %v768_v46 = vld [vmem:[#allocation11 + $0x38] sm:$0xff]  ;;  %v767_v47 = vld [vmem:[#allocation11 + $0x30] sm:$0xff]  ;;  %v766_v48 = vld [vmem:[#allocation11 + $0x28] sm:$0xff] }
  0x28   :  { %204 = vmatpush.bf16.msra.mxu0 %v733_v6  ;;  %v765_v49 = vld [vmem:[#allocation11 + $0x20] sm:$0xff]  ;;  %v764_v50 = vld [vmem:[#allocation11 + $0x18] sm:$0xff]  ;;  %v763_v51 = vld [vmem:[#allocation11 + $0x10] sm:$0xff] }
  0x29   :  { %287 = vmatpush.bf16.msra.mxu1 %v741_v7  ;;  %451 = vmatpush.bf16.msra.mxu3 %v759_v33  ;;  %v780_v52 = vld [vmem:[%s1089_s6] ss:$0 sm:$0xff]  ;;  %v762_v58 = vld [vmem:[#allocation11 + $0x8] sm:$0xff]  ;;  %v761_v59 = vld [vmem:[#allocation11] sm:$0xff] }
  0x2a   :  { %369 = vmatpush.bf16.msra.mxu2 %v750_v20  ;;  %v781_v60 = vld [vmem:[%s1091_s8] ss:$0 sm:$0xff] }
  0x2b   :  { %v782_v2 = vld [vmem:[%s1093_s10] ss:$0 sm:$0xff] }
  0x2c   :  { %205 = vmatpush.bf16.msra.mxu0 %v732_v8 }
  0x2d   :  { %288 = vmatpush.bf16.msra.mxu1 %v740_v9  ;;  %452 = vmatpush.bf16.msra.mxu3 %v758_v34 }
  0x2e   :  { %370 = vmatpush.bf16.msra.mxu2 %v749_v21 }
  0x30   :  { %206 = vmatpush.bf16.msra.mxu0 %v731_v10 }
  0x31   :  { %289 = vmatpush.bf16.msra.mxu1 %v739_v11  ;;  %453 = vmatpush.bf16.msra.mxu3 %v757_v35 }
  0x32   :  { %371 = vmatpush.bf16.msra.mxu2 %v748_v22 }
  0x34   :  { %207 = vmatpush.bf16.msra.mxu0 %v730_v12 }
  0x35   :  { %290 = vmatpush.bf16.msra.mxu1 %v738_v16  ;;  %454 = vmatpush.bf16.msra.mxu3 %v756_v36 }
  0x36   :  { %372 = vmatpush.bf16.msra.mxu2 %v747_v23 }
  0x38   :  { %208 = vmatpush.bf16.msra.mxu0 %v729_v13 }
  0x39   :  { %291 = vmatpush.bf16.msra.mxu1 %v737_v17  ;;  %455 = vmatpush.bf16.msra.mxu3 %v755_v37 }
  0x3a   :  { %373 = vmatpush.bf16.msra.mxu2 %v746_v30 }
  0x3b   :  { %209 = vmatmul.bf16.vlgmr.msra.gmra.mxu0 %v132_v15 }
  0x3c   :  { %533 = vmatpush.bf16.msrb.mxu0 %v768_v46 }
  0x3d   :  { %456 = vmatpush.bf16.msra.mxu3 %v754_v44 }
  0x3e   :  { %374 = vmatpush.bf16.msra.mxu2 %v745_v31 }
  0x40   :  { %534 = vmatpush.bf16.msrb.mxu0 %v767_v47 }
  0x41   :  { %457 = vmatpush.bf16.msra.mxu3 %v753_v45 }
  0x44   :  { %535 = vmatpush.bf16.msrb.mxu0 %v766_v48 }
  0x48   :  { %536 = vmatpush.bf16.msrb.mxu0 %v765_v49 }
  0x4c   :  { %537 = vmatpush.bf16.msrb.mxu0 %v764_v50 }
  0x50   :  { %538 = vmatpush.bf16.msrb.mxu0 %v763_v51 }
  0x54   :  { %539 = vmatpush.bf16.msrb.mxu0 %v762_v58 }
  0x58   :  { %540 = vmatpush.bf16.msrb.mxu0 %v761_v59 }
  0xb8   :  { %v210_v25 = vpop.f32.mrf.mxu0 }
  0xb9   :  { %v211_v26 = vadd.f32 %v778_v24, %v210_v25 }
  0xbb   :  { %v214_v27 = vmax.f32 %v211_v26, 0.0 }
  0xbd   :  { %v215_v28 = vpack.c.bf16 %v214_v27, %v214_v27 }
  0xbf   :  { %292 = vmatmul.bf16.vlgmr.msra.gmra.mxu1 %v215_v28 }
  0xc0   :  { %v212_v29 = vpop.f32.mrf.mxu0 }
 0x13c   :  { %v293_v39 = vpop.f32.mrf.mxu1 }
 0x13d   :  { %v294_v40 = vadd.f32 %v779_v38, %v293_v39 }
 0x13f   :  { %v297_v41 = vmax.f32 %v294_v40, 0.0 }
 0x141   :  { %v298_v42 = vpack.c.bf16 %v297_v41, %v297_v41 }
 0x143   :  { %375 = vmatmul.bf16.vlgmr.msra.gmra.mxu2 %v298_v42 }
 0x144   :  { %v295_v43 = vpop.f32.mrf.mxu1 }
 0x1c6   :  { %v376_v53 = vpop.f32.mrf.mxu2 }
 0x1c7   :  { %v377_v54 = vadd.f32 %v780_v52, %v376_v53 }
 0x1c9   :  { %v380_v55 = vmax.f32 %v377_v54, 0.0 }
 0x1cb   :  { %v381_v56 = vpack.c.bf16 %v380_v55, %v380_v55 }
 0x1cd   :  { %458 = vmatmul.bf16.vlgmr.msra.gmra.mxu3 %v381_v56 }
 0x1ce   :  { %v378_v57 = vpop.f32.mrf.mxu2 }
 0x250   :  { %v459_v61 = vpop.f32.mrf.mxu3 }
 0x251   :  { %v460_v62 = vadd.f32 %v781_v60, %v459_v61 }
 0x253   :  { %v463_v63 = vmax.f32 %v460_v62, 0.0 }
 0x255   :  { %v464_v0 = vpack.c.bf16 %v463_v63, %v463_v63 }
 0x257   :  { %541 = vmatmul.bf16.vlgmr.msrb.gmra.mxu0 %v464_v0 }
 0x258   :  { %v461_v1 = vpop.f32.mrf.mxu3 }
 0x2d4   :  { %v542_v3 = vpop.f32.mrf.mxu0 }
 0x2d5   :  { %v543_v4 = vadd.f32 %v782_v2, %v542_v3 }
 0x2d7   :  { %783 = vtanh.f32 %v543_v4 }
 0x2dc   :  { %v544_v5 = vpop.f32.mrf.mxu0 }
 0x2dd   :  { %v784_v6 = vpop.eup %783 }
 0x2de   :  { %v547_v7 = vmul.f32 2.0, %v784_v6 }
 0x2e0   :  { %548 = vst [vmem:[#allocation13] sm:$0xff] %v547_v7 }
 0x2e1   :  { %559 = dma.vmem_to_hbm [thread:$0]  %s555_s5, 128, %s557_s14, [#allocation4]  }
 0x2e2   :  { %961 = dma.done.wait [#allocation4], 128  }
 0x2e3   :  { %962 = vsyncadd [#allocation4], 4294967168 }
 0x2e4   :  { %564 = vsyncpa [#allocation3], 1 }
 0x2e5   :  { %565 = vsyncpa [#allocation6], 1 }
 0x2e6   :  { %566 = vsyncpa [#allocation9], 1 }
 0x2e7   :  { %567 = vsyncpa [#allocation12], 1 }
 0x2e8   :  { %568 = vsyncpa [#allocation4], 1 }

</bundles_post_ra>
